<compile_context>
chip_gen: v5e
topology: v5e:2x2
jax: 0.10.0
libtpu: 0.0.40
codegen_flags: <defaults>
</compile_context>

<pallas_src>
import functools

import jax
import jax.numpy as jnp
from jax.experimental import pallas as pl
from jax.experimental.pallas import tpu as pltpu


def _round_up(x, m):
    return (x + m - 1) // m * m


# -----------------------------------------------------------------------------
# Fused kernel (small feature maps): pool + FC1(ReLU) + FC2(Sigmoid) + scale,
# one grid step per batch element, x read once / written once.
# -----------------------------------------------------------------------------
def _fused_se_kernel(x_ref, w1_ref, b1_ref, w2_ref, b2_ref, o_ref, *, inv_hw, c):
    x = x_ref[0]                                                  # (C, HW)
    # --- squeeze: spatial mean per channel (lane-axis reduction, C on sublanes)
    y_col = jnp.sum(x.astype(jnp.float32), axis=1, keepdims=True) * inv_hw   # (C, 1)
    cp = w1_ref.shape[1]
    if cp > c:                                                    # pad channels for MXU
        y_col = jnp.concatenate(
            [y_col, jnp.zeros((cp - c, 1), jnp.float32)], axis=0)            # (Cp, 1)
    yb = jnp.broadcast_to(y_col, (cp, 128))                       # lane-broadcast
    # --- excite: column-oriented FCs (weights kept in PyTorch (out, in) layout)
    h = jnp.maximum(
        jnp.dot(w1_ref[...], yb, preferred_element_type=jnp.float32) + b1_ref[...],
        0.0)                                                      # (Hp, 128)
    s = jax.nn.sigmoid(
        jnp.dot(w2_ref[...], h, preferred_element_type=jnp.float32) + b2_ref[...])
    s_col = s[:c, 0:1].astype(x.dtype)                            # (C, 1)
    # --- scale
    o_ref[0] = x * s_col


# -----------------------------------------------------------------------------
# Tiled path, kernel 1: global average pool (tiled lane reduction) + FC1 + FC2.
# grid = (batch, spatial tiles); per-batch accumulator in VMEM scratch.
# -----------------------------------------------------------------------------
def _pool_fc_kernel(x_ref, w1_ref, b1_ref, w2_ref, b2_ref, s_ref, acc_ref, *,
                    inv_hw, hw, tsp, c):
    i = pl.program_id(1)

    @pl.when(i == 0)
    def _():
        acc_ref[...] = jnp.zeros_like(acc_ref)

    x = x_ref[0].astype(jnp.float32)                              # (C, tsp)
    if hw % tsp:                                                  # mask partial boundary tile
        lane = jax.lax.broadcasted_iota(jnp.int32, x.shape, 1) + i * tsp
        x = jnp.where(lane < hw, x, 0.0)
    acc_ref[...] += jnp.sum(x, axis=1, keepdims=True)             # (C, 1)

    @pl.when(i == pl.num_programs(1) - 1)
    def _():
        cp = w1_ref.shape[1]
        y_col = acc_ref[...] * inv_hw                             # (C, 1) channel means
        if cp > c:
            y_col = jnp.concatenate(
                [y_col, jnp.zeros((cp - c, 1), jnp.float32)], axis=0)
        yb = jnp.broadcast_to(y_col, (cp, 128))
        h = jnp.maximum(
            jnp.dot(w1_ref[...], yb, preferred_element_type=jnp.float32) + b1_ref[...],
            0.0)
        s = jax.nn.sigmoid(
            jnp.dot(w2_ref[...], h, preferred_element_type=jnp.float32) + b2_ref[...])
        s_ref[0] = s[:c, 0:1]                                     # (C, 1)


# -----------------------------------------------------------------------------
# Tiled path, kernel 2: out = x * s, batched channel re-scale (s broadcast on lanes).
# -----------------------------------------------------------------------------
def _scale_kernel(x_ref, s_ref, o_ref):
    o_ref[...] = x_ref[...] * s_ref[...].astype(o_ref.dtype)      # (1,C,tsp)*(1,C,1)


# -----------------------------------------------------------------------------
# squeeze_excitation_block forward (NCHW in / NCHW out, PyTorch semantics)
# -----------------------------------------------------------------------------
def squeeze_excitation(x_nchw, fc1_w, fc1_b, fc2_w, fc2_b, *,
                       prefer_fused=None, spatial_tile=None):
    N, C, H, W = x_nchw.shape
    hid = fc1_w.shape[0]                       # in_channels // 8
    assert hid >= 1, "in_channels must be >= 8 for this module"
    HW = H * W
    Cp = _round_up(C, 128)
    Hp = _round_up(hid, 128)
    dtype = x_nchw.dtype
    isz = jnp.dtype(dtype).itemsize

    # Free reshape: NCHW -> (N, C, H*W); spatial axis is naturally lane-dense.
    x3 = x_nchw.reshape(N, C, HW)

    # Tiny padded FC weights (PyTorch (out, in) orientation; fully VMEM-resident).
    f32 = jnp.float32
    w1_p = jnp.zeros((Hp, Cp), f32).at[:hid, :C].set(fc1_w.astype(f32))
    b1_p = jnp.zeros((Hp, 1), f32).at[:hid, 0].set(fc1_b.astype(f32))
    w2_p = jnp.zeros((Cp, Hp), f32).at[:C, :hid].set(fc2_w.astype(f32))
    b2_p = jnp.zeros((Cp, 1), f32).at[:C, 0].set(fc2_b.astype(f32))

    weight_bytes = 4 * (2 * Hp * Cp + Hp + Cp)
    fused_bytes = 4 * C * HW * isz + 2 * weight_bytes   # in+out, double-buffered
    if prefer_fused is None:
        prefer_fused = fused_bytes <= 16 * 1024 * 1024

    cparams = dict(vmem_limit_bytes=32 * 1024 * 1024)

    if prefer_fused:
        # ------------------ single fused pass over x ------------------------
        out3 = pl.pallas_call(
            functools.partial(_fused_se_kernel, inv_hw=1.0 / HW, c=C),
            out_shape=jax.ShapeDtypeStruct((N, C, HW), dtype),
            grid_spec=pltpu.PrefetchScalarGridSpec(
                num_scalar_prefetch=0,
                grid=(N,),
                in_specs=[
                    pl.BlockSpec((1, C, HW), lambda n: (n, 0, 0)),
                    pl.BlockSpec((Hp, Cp), lambda n: (0, 0)),
                    pl.BlockSpec((Hp, 1), lambda n: (0, 0)),
                    pl.BlockSpec((Cp, Hp), lambda n: (0, 0)),
                    pl.BlockSpec((Cp, 1), lambda n: (0, 0)),
                ],
                out_specs=pl.BlockSpec((1, C, HW), lambda n: (n, 0, 0)),
            ),
            compiler_params=pltpu.CompilerParams(
                dimension_semantics=("parallel",), **cparams),
        )(x3, w1_p, b1_p, w2_p, b2_p)
        return out3.reshape(N, C, H, W)

    # ---------------------- tiled two-kernel path ----------------------------
    if spatial_tile is not None:
        assert spatial_tile % 128 == 0
        tsp = spatial_tile
    else:
        cap = max(128, ((2 * 1024 * 1024) // (C * isz)) // 128 * 128)
        tsp = max(128, min(_round_up(HW, 128), cap))
    n_sp = pl.cdiv(HW, tsp)

    # Kernel 1: s = sigmoid(fc2(relu(fc1(mean_hw(x)))))  -> (N, C, 1) f32
    s = pl.pallas_call(
        functools.partial(_pool_fc_kernel, inv_hw=1.0 / HW, hw=HW, tsp=tsp, c=C),
        out_shape=jax.ShapeDtypeStruct((N, C, 1), jnp.float32),
        grid_spec=pltpu.PrefetchScalarGridSpec(
            num_scalar_prefetch=0,
            grid=(N, n_sp),
            in_specs=[
                pl.BlockSpec((1, C, tsp), lambda n, i: (n, 0, i)),
                pl.BlockSpec((Hp, Cp), lambda n, i: (0, 0)),
                pl.BlockSpec((Hp, 1), lambda n, i: (0, 0)),
                pl.BlockSpec((Cp, Hp), lambda n, i: (0, 0)),
                pl.BlockSpec((Cp, 1), lambda n, i: (0, 0)),
            ],
            out_specs=pl.BlockSpec((1, C, 1), lambda n, i: (n, 0, 0)),
            scratch_shapes=[pltpu.VMEM((C, 1), jnp.float32)],
        ),
        compiler_params=pltpu.CompilerParams(
            dimension_semantics=("parallel", "arbitrary"), **cparams),
    )(x3, w1_p, b1_p, w2_p, b2_p)

    # Kernel 2: out = x * s (single batched launch, lane-dense blocks).
    out3 = pl.pallas_call(
        _scale_kernel,
        out_shape=jax.ShapeDtypeStruct((N, C, HW), dtype),
        grid_spec=pltpu.PrefetchScalarGridSpec(
            num_scalar_prefetch=0,
            grid=(N, n_sp),
            in_specs=[
                pl.BlockSpec((1, C, tsp), lambda n, i: (n, 0, i)),
                pl.BlockSpec((1, C, 1), lambda n, i: (n, 0, 0)),
            ],
            out_specs=pl.BlockSpec((1, C, tsp), lambda n, i: (n, 0, i)),
        ),
        compiler_params=pltpu.CompilerParams(
            dimension_semantics=("parallel", "parallel"), **cparams),
    )(x3, s)
    return out3.reshape(N, C, H, W)


# -----------------------------------------------------------------------------
if __name__ == "__main__":
    key = jax.random.PRNGKey(0)

    def make_inputs(k, N, C, H, W):
        hid = C // 8
        ks = [jax.random.fold_in(k, i) for i in range(5)]
        x = jax.random.normal(ks[0], (N, C, H, W), jnp.float32)
        w1 = jax.random.normal(ks[1], (hid, C), jnp.float32) * (C ** -0.5)
        b1 = jax.random.normal(ks[2], (hid,), jnp.float32) * 0.1
        w2 = jax.random.normal(ks[3], (C, hid), jnp.float32) * (hid ** -0.5)
        b2 = jax.random.normal(ks[4], (C,), jnp.float32) * 0.1
        return x, w1, b1, w2, b2

    def reference(x, w1, b1, w2, b2):
        ym = jnp.mean(x, axis=(2, 3))                                  # (N, C)
        h = jnp.maximum(ym @ w1.T + b1, 0.0)
        s = jax.nn.sigmoid(h @ w2.T + b2)
        return x * s[:, :, None, None]

    fwd = jax.jit(squeeze_excitation,
                  static_argnames=("prefer_fused", "spatial_tile"))

    cases = [
        ((2, 64, 16, 16), {}),                                          # fused path
        ((2, 64, 16, 16), {"prefer_fused": False}),                     # tiled, 1 tile
        ((2, 64, 24, 24), {"prefer_fused": False, "spatial_tile": 128}),  # tiled, masked
        ((2, 32, 12, 12), {}),                                          # fused, HW % 128 != 0
    ]
    for idx, (shape, kwargs) in enumerate(cases):
        args = make_inputs(jax.random.fold_in(key, idx), *shape)
        y = jax.block_until_ready(fwd(*args, **kwargs))
        ref = reference(*args)
        assert y.shape == args[0].shape, (y.shape, args[0].shape)
        assert bool(jnp.all(jnp.isfinite(y)))
        err = float(jnp.max(jnp.abs(y - ref)))
        assert bool(jnp.allclose(y, ref, atol=2e-3, rtol=2e-3)), (idx, err)

    print("KERNEL_OK")
</pallas_src>

<mosaic_0001>
module attributes {stable_mosaic.version = 11 : i64} {
  func.func @_fused_se_kernel(%arg0: i32, %arg1: memref<1x64x256xf32, #tpu.memory_space<vmem>>, %arg2: memref<128x128xf32, #tpu.memory_space<vmem>>, %arg3: memref<128x1xf32, #tpu.memory_space<vmem>>, %arg4: memref<128x128xf32, #tpu.memory_space<vmem>>, %arg5: memref<128x1xf32, #tpu.memory_space<vmem>>, %arg6: memref<1x64x256xf32, #tpu.memory_space<vmem>>) attributes {dimension_semantics = [#tpu.dimension_semantics<parallel>], iteration_bounds = array<i64: 2>, scalar_prefetch = 0 : i64, scratch_operands = 0 : i64, tpu.core_type = #tpu.core_type<tc>, window_params = [{transform_indices = @transform_0, window_bounds = array<i64: 1, 64, 256>}, {pipeline_mode = #tpu.pipeline_mode<synchronous>, transform_indices = @transform_1, window_bounds = array<i64: 128, 128>}, {pipeline_mode = #tpu.pipeline_mode<synchronous>, transform_indices = @transform_2, window_bounds = array<i64: 128, 1>}, {pipeline_mode = #tpu.pipeline_mode<synchronous>, transform_indices = @transform_3, window_bounds = array<i64: 128, 128>}, {pipeline_mode = #tpu.pipeline_mode<synchronous>, transform_indices = @transform_4, window_bounds = array<i64: 128, 1>}, {transform_indices = @transform_5, window_bounds = array<i64: 1, 64, 256>}]} {
    %c0 = arith.constant 0 : index
    %c0_0 = arith.constant 0 : index
    %c0_1 = arith.constant 0 : index
    %0 = vector.load %arg1[%c0, %c0_0, %c0_1] : memref<1x64x256xf32, #tpu.memory_space<vmem>>, vector<1x64x256xf32>
    %1 = vector.shape_cast %0 : vector<1x64x256xf32> to vector<64x256xf32>
    %cst = arith.constant dense<0.000000e+00> : vector<64xf32>
    %2 = vector.multi_reduction <add>, %1, %cst [1] : vector<64x256xf32> to vector<64xf32>
    %3 = vector.shape_cast %2 : vector<64xf32> to vector<64x1xf32>
    %cst_2 = arith.constant 3.906250e-03 : f32
    %4 = vector.broadcast %cst_2 : f32 to vector<64x1xf32>
    %5 = arith.mulf %3, %4 : vector<64x1xf32>
    %cst_3 = arith.constant 0.000000e+00 : f32
    %6 = vector.broadcast %cst_3 : f32 to vector<64x1xf32>
    %7 = tpu.concatenate %5, %6 in 0 : vector<64x1xf32>, vector<64x1xf32> -> vector<128x1xf32>
    %8 = vector.shape_cast %7 : vector<128x1xf32> to vector<128x1xf32>
    %9 = vector.broadcast %8 : vector<128x1xf32> to vector<128x128xf32>
    %c0_4 = arith.constant 0 : index
    %c0_5 = arith.constant 0 : index
    %10 = vector.load %arg2[%c0_4, %c0_5] : memref<128x128xf32, #tpu.memory_space<vmem>>, vector<128x128xf32>
    %cst_6 = arith.constant dense<0.000000e+00> : vector<128x128xf32>
    %11 = tpu.matmul %10, %9, %cst_6 {dimension_numbers = #tpu.dot_dimension_numbers<[1], [0], [0], [1], [0, 0, 1, 1], [], []>} : vector<128x128xf32>, vector<128x128xf32>, vector<128x128xf32> -> vector<128x128xf32>
    %c0_7 = arith.constant 0 : index
    %c0_8 = arith.constant 0 : index
    %12 = vector.load %arg3[%c0_7, %c0_8] : memref<128x1xf32, #tpu.memory_space<vmem>>, vector<128x1xf32>
    %13 = vector.broadcast %12 : vector<128x1xf32> to vector<128x128xf32>
    %14 = arith.addf %11, %13 : vector<128x128xf32>
    %cst_9 = arith.constant 0.000000e+00 : f32
    %15 = vector.broadcast %cst_9 : f32 to vector<128x128xf32>
    %16 = arith.maximumf %14, %15 : vector<128x128xf32>
    %c0_10 = arith.constant 0 : index
    %c0_11 = arith.constant 0 : index
    %17 = vector.load %arg4[%c0_10, %c0_11] : memref<128x128xf32, #tpu.memory_space<vmem>>, vector<128x128xf32>
    %cst_12 = arith.constant dense<0.000000e+00> : vector<128x128xf32>
    %18 = tpu.matmul %17, %16, %cst_12 {dimension_numbers = #tpu.dot_dimension_numbers<[1], [0], [0], [1], [0, 0, 1, 1], [], []>} : vector<128x128xf32>, vector<128x128xf32>, vector<128x128xf32> -> vector<128x128xf32>
    %c0_13 = arith.constant 0 : index
    %c0_14 = arith.constant 0 : index
    %19 = vector.load %arg5[%c0_13, %c0_14] : memref<128x1xf32, #tpu.memory_space<vmem>>, vector<128x1xf32>
    %20 = vector.broadcast %19 : vector<128x1xf32> to vector<128x128xf32>
    %21 = arith.addf %18, %20 : vector<128x128xf32>
    %22 = arith.negf %21 : vector<128x128xf32>
    %23 = math.exp %22 : vector<128x128xf32>
    %cst_15 = arith.constant 1.000000e+00 : f32
    %24 = vector.broadcast %cst_15 : f32 to vector<128x128xf32>
    %25 = arith.addf %24, %23 : vector<128x128xf32>
    %26 = arith.divf %24, %25 : vector<128x128xf32>
    %27 = vector.extract_strided_slice %26 {offsets = [0, 0], sizes = [64, 1], strides = [1, 1]} : vector<128x128xf32> to vector<64x1xf32>
    %28 = vector.broadcast %27 : vector<64x1xf32> to vector<64x256xf32>
    %29 = arith.mulf %1, %28 : vector<64x256xf32>
    %c0_16 = arith.constant 0 : index
    %c0_17 = arith.constant 0 : index
    %c0_18 = arith.constant 0 : index
    %30 = vector.load %arg6[%c0_16, %c0_17, %c0_18] : memref<1x64x256xf32, #tpu.memory_space<vmem>>, vector<1x64x256xf32>
    %31 = vector.shape_cast %30 : vector<1x64x256xf32> to vector<64x256xf32>
    %32 = vector.shape_cast %29 : vector<64x256xf32> to vector<1x64x256xf32>
    tpu.vector_store %arg6[%c0_16, %c0_17, %c0_18], %32 {strides = array<i32>} : memref<1x64x256xf32, #tpu.memory_space<vmem>>, vector<1x64x256xf32>,
    return
  }
  func.func @transform_0(%arg0: i32) -> (i32, i32, i32) {
    %c0_i32 = arith.constant 0 : i32
    %c0_i32_0 = arith.constant 0 : i32
    %c0_i32_1 = arith.constant 0 : i32
    return %arg0, %c0_i32, %c0_i32_0 : i32, i32, i32
  }
  func.func @transform_1(%arg0: i32) -> (i32, i32) {
    %c0_i32 = arith.constant 0 : i32
    %c0_i32_0 = arith.constant 0 : i32
    %c0_i32_1 = arith.constant 0 : i32
    return %c0_i32, %c0_i32_0 : i32, i32
  }
  func.func @transform_2(%arg0: i32) -> (i32, i32) {
    %c0_i32 = arith.constant 0 : i32
    %c0_i32_0 = arith.constant 0 : i32
    %c0_i32_1 = arith.constant 0 : i32
    return %c0_i32, %c0_i32_0 : i32, i32
  }
  func.func @transform_3(%arg0: i32) -> (i32, i32) {
    %c0_i32 = arith.constant 0 : i32
    %c0_i32_0 = arith.constant 0 : i32
    %c0_i32_1 = arith.constant 0 : i32
    return %c0_i32, %c0_i32_0 : i32, i32
  }
  func.func @transform_4(%arg0: i32) -> (i32, i32) {
    %c0_i32 = arith.constant 0 : i32
    %c0_i32_0 = arith.constant 0 : i32
    %c0_i32_1 = arith.constant 0 : i32
    return %c0_i32, %c0_i32_0 : i32, i32
  }
  func.func @transform_5(%arg0: i32) -> (i32, i32, i32) {
    %c0_i32 = arith.constant 0 : i32
    %c0_i32_0 = arith.constant 0 : i32
    %c0_i32_1 = arith.constant 0 : i32
    return %arg0, %c0_i32, %c0_i32_0 : i32, i32, i32
  }
}

</mosaic_0001>

<bundles_post_ra>
// kernel: squeeze_excitation.1
= control target key start
LH: loop header
LB: loop body
LE: loop exit
PB: predicated region body
PF: predicated region fallthrough
CT: control target
= control target key end

     0   :  { %s1125_s18 = smov 0   ;;  %s1416_s0 = inlined_call_operand.vmem [shape: f32[2,64,256], index: 0, kind: input, shape index: {}]   ;;  %s1417_s1 = inlined_call_operand.vmem [shape: f32[128,128], index: 1, kind: input, shape index: {}]   ;;  %s1418_s2 = inlined_call_operand.vmem [shape: f32[128,1], index: 2, kind: input, shape index: {}]   ;;  %s1419_s3 = inlined_call_operand.vmem [shape: f32[128,128], index: 3, kind: input, shape index: {}]   ;;  %s1420_s4 = inlined_call_operand.vmem [shape: f32[128,1], index: 4, kind: input, shape index: {}]   ;;  %s1421_s5 = inlined_call_operand.vmem [shape: f32[2,64,256], index: 5, kind: output, shape index: {}]  }
   0x1 LB: > { %s951_s19 = sadd.s32 4294967295, %s1092_s18   ;;  %p955_p0 = scmp.ge.s32.totalorder %s1092_s18, 1  ;;  %s1092_s18 = sphi %s1125_s18, %s15_s18  }
   0x2   : > { %p187_p1 = scmp.lt.s32.totalorder %s1092_s18, 3 }
   0x4   : > { %p188_p2 = pnand %p955_p0, %p187_p1 }
   0x5   : > { %p215_p3 = scmp.lt.s32.totalorder (!%p188_p2), %s951_s19, 1 }
   0x6   : > { %191 = sbr.rel (%p188_p2) target bundleno = 812 (0x32c), region = 40 }
   0xb   : > { %s1423_s19 = smov (!%p215_p3, %s951_s19), 1  ;;  %v1094_v24 = vmov 0   ;;  %v345_v44 = vld [vmem:[%s1418_s2 + $0x58] sm:$0xff]  ;;  %v348_v45 = vld [vmem:[%s1418_s2 + $0x70] sm:$0xff]  ;;  %v342_v47 = vld [vmem:[%s1418_s2 + $0x40] sm:$0xff] }
   0xc   : > { %s970_s20 = sshll.u32 %s1423_s19, 7  ;;  %1033 = vset.pattern.permute.xlu1 %v1094_v24  ;;  %1027 = vset.pattern.permute.xlu0 %v1094_v24  ;;  %v346_v48 = vld [vmem:[%s1418_s2 + $0x60] sm:$0xff]  ;;  %v349_v49 = vld [vmem:[%s1418_s2 + $0x78] sm:$0xff]  ;;  %v339_v50 = vld [vmem:[%s1418_s2 + $0x28] sm:$0xff] }
   0xd   : > { %s1141_s23 = scalar_lea.vmem %s1416_s0, %s970_s20  ;;  %1021 = vset.pattern.permute.xlu2 %v1094_v24  ;;  %v343_v51 = vld [vmem:[%s1418_s2 + $0x48] sm:$0xff]  ;;  %v336_v53 = vld [vmem:[%s1418_s2 + $0x10] sm:$0xff]  ;;  %v527_v56 = vld [vmem:[%s1420_s4] sm:$0xff]  ;;  %s1379_s8 = scalar_lea.vmem %s1421_s5, %s970_s20 }
   0xe   : > { %v239_v0 = vld [vmem:[%s1141_s23 + $0x70] sm:$0xff]  ;;  %v240_v1 = vld [vmem:[%s1141_s23 + $0x78] sm:$0xff]  ;;  %v237_v9 = vld [vmem:[%s1141_s23 + $0x60] sm:$0xff] }
   0xf   : > { %v235_v2 = vld [vmem:[%s1141_s23 + $0x50] sm:$0xff]  ;;  %v262_v3 = vadd.f32 %v240_v1, %v239_v0  ;;  %v236_v4 = vld [vmem:[%s1141_s23 + $0x58] sm:$0xff]  ;;  %v238_v10 = vld [vmem:[%s1141_s23 + $0x68] sm:$0xff] }
  0x10   : > { %v231_v5 = vld [vmem:[%s1141_s23 + $0x30] sm:$0xff]  ;;  %v232_v6 = vld [vmem:[%s1141_s23 + $0x38] sm:$0xff]  ;;  %v256_v7 = vadd.f32 %v236_v4, %v235_v2  ;;  %v233_v11 = vld [vmem:[%s1141_s23 + $0x40] sm:$0xff]  ;;  %v259_v15 = vadd.f32 %v238_v10, %v237_v9 }
  0x11   : > { %v250_v8 = vadd.f32 %v232_v6, %v231_v5  ;;  %263 = vadd.xlane.f32.xlu0 %v262_v3  ;;  %v234_v12 = vld [vmem:[%s1141_s23 + $0x48] sm:$0xff]  ;;  %v1154_v13 = vld [vmem:[%s1141_s23 + $0x20] sm:$0xff]  ;;  %v1162_v18 = vld [vmem:[%s1141_s23 + $0x10] sm:$0xff] }
  0x12   : > { %257 = vadd.xlane.f32.xlu1 %v256_v7  ;;  %v1157_v14 = vld [vmem:[%s1141_s23 + $0x28] sm:$0xff]  ;;  %v253_v16 = vadd.f32 %v234_v12, %v233_v11  ;;  %v1165_v19 = vld [vmem:[%s1141_s23 + $0x18] sm:$0xff]  ;;  %v1168_v20 = vld [vmem:[%s1141_s23] sm:$0xff] }
  0x13   : > { %251 = vadd.xlane.f32.xlu2 %v250_v8  ;;  %v247_v17 = vadd.f32 %v1157_v14, %v1154_v13  ;;  %v1171_v21 = vld [vmem:[%s1141_s23 + $0x8] sm:$0xff]  ;;  %v244_v22 = vadd.f32 %v1165_v19, %v1162_v18  ;;  %v340_v54 = vld [vmem:[%s1418_s2 + $0x30] sm:$0xff]  ;;  %v337_v57 = vld [vmem:[%s1418_s2 + $0x18] sm:$0xff] }
  0x14   : > { %v241_v23 = vadd.f32 %v1171_v21, %v1168_v20  ;;  %v347_v52 = vld [vmem:[%s1418_s2 + $0x68] sm:$0xff]  ;;  %v344_v55 = vld [vmem:[%s1418_s2 + $0x50] sm:$0xff]  ;;  %v341_v58 = vld [vmem:[%s1418_s2 + $0x38] sm:$0xff] }
  0x15   : > { %v530_v59 = vld [vmem:[%s1420_s4 + $0x18] sm:$0xff]  ;;  %v334_v60 = vld [vmem:[%s1418_s2] sm:$0xff]  ;;  %v533_v62 = vld [vmem:[%s1420_s4 + $0x30] sm:$0xff] }
  0x16   : > { %v338_v61 = vld [vmem:[%s1418_s2 + $0x20] sm:$0xff]  ;;  %v529_v63 = vld [vmem:[%s1420_s4 + $0x10] sm:$0xff]  ;;  %v335_v0 = vld [vmem:[%s1418_s2 + $0x8] sm:$0xff] }
  0x17   : > { %v532_v1 = vld [vmem:[%s1420_s4 + $0x28] sm:$0xff]  ;;  %v531_v3 = vld [vmem:[%s1420_s4 + $0x20] sm:$0xff]  ;;  %v534_v4 = vld [vmem:[%s1420_s4 + $0x38] sm:$0xff] }
  0x18   : > { %v528_v2 = vld [vmem:[%s1420_s4 + $0x8] sm:$0xff] }
  0x19   : > { %260 = vadd.xlane.f32.xlu0 %v259_v15  ;;  %v327_v24 = vld [vmem:[%s1417_s1 + $0x48] sm:$0xff] }
  0x1a   : > { %254 = vadd.xlane.f32.xlu1 %v253_v16 }
  0x1b   : > { %248 = vadd.xlane.f32.xlu2 %v247_v17 }
  0x21   : > { %245 = vadd.xlane.f32.xlu0 %v244_v22 }
  0x22   : > { %242 = vadd.xlane.f32.xlu1 %v241_v23  ;;  %v318_v23 = vld [vmem:[%s1417_s1] sm:$0xff] }
  0x84   : > { %v264_v25 = vpop.xlane.xlu0 %263 }
  0x85   : > { %v258_v26 = vpop.xlane.xlu1 %257  ;;  %v272_v28 = vmul.f32 0.00390625, %v264_v25  ;;  %v319_v25 = vld [vmem:[%s1417_s1 + $0x8] sm:$0xff] }
  0x86   : > { %v252_v27 = vpop.xlane.xlu2 %251  ;;  %v270_v33 = vmul.f32 0.00390625, %v258_v26  ;;  %v328_v26 = vld [vmem:[%s1417_s1 + $0x50] sm:$0xff] }
  0x87   : > { %v268_v34 = vmul.f32 0.00390625, %v252_v27  ;;  %v320_v27 = vld [vmem:[%s1417_s1 + $0x10] sm:$0xff] }
  0x8c   : > { %v261_v29 = vpop.xlane.xlu0 %260 }
  0x8d   : > { %v271_v30 = vmul.f32 0.00390625, %v261_v29  ;;  %v255_v31 = vpop.xlane.xlu1 %254  ;;  %v321_v29 = vld [vmem:[%s1417_s1 + $0x18] sm:$0xff] }
  0x8e   : > { %v249_v32 = vpop.xlane.xlu2 %248  ;;  %v269_v35 = vmul.f32 0.00390625, %v255_v31  ;;  %v322_v31 = vld [vmem:[%s1417_s1 + $0x20] sm:$0xff] }
  0x8f   : > { %v267_v36 = vmul.f32 0.00390625, %v249_v32  ;;  %v1022_v37 = vpack.i.bf16 %v271_v30, %v272_v28  ;;  %v329_v28 = vld [vmem:[%s1417_s1 + $0x58] sm:$0xff]  ;;  %v330_v30 = vld [vmem:[%s1417_s1 + $0x60] sm:$0xff]  ;;  %v331_v32 = vld [vmem:[%s1417_s1 + $0x68] sm:$0xff] }
  0x90   : > { %v1028_v38 = vpack.i.bf16 %v269_v35, %v270_v33  ;;  %v323_v33 = vld [vmem:[%s1417_s1 + $0x28] sm:$0xff]  ;;  %v324_v35 = vld [vmem:[%s1417_s1 + $0x30] sm:$0xff] }
  0x91   : > { %v1034_v39 = vpack.i.bf16 %v267_v36, %v268_v34  ;;  %1023 = vperm.xlu2 %1021, %v1022_v37   ;;  %v332_v34 = vld [vmem:[%s1417_s1 + $0x70] sm:$0xff]  ;;  %v333_v36 = vld [vmem:[%s1417_s1 + $0x78] sm:$0xff] }
  0x92   : > { %1029 = vperm.xlu0 %1027, %v1028_v38   ;;  %v325_v37 = vld [vmem:[%s1417_s1 + $0x38] sm:$0xff]  ;;  %v326_v38 = vld [vmem:[%s1417_s1 + $0x40] sm:$0xff] }
  0x93   : > { %1035 = vperm.xlu1 %1033, %v1034_v39  }
  0x94   : > { %v246_v40 = vpop.xlane.xlu0 %245 }
  0x95   : > { %v266_v41 = vmul.f32 0.00390625, %v246_v40  ;;  %v243_v42 = vpop.xlane.xlu1 %242 }
  0x96   : > { %v265_v43 = vmul.f32 0.00390625, %v243_v42 }
  0x98   : > { %v1039_v46 = vpack.i.bf16 %v265_v43, %v266_v41 }
  0x9a   : > { %407 = vperm.xlu0 %1027, %v345_v44   ;;  %1040 = vperm.xlu2 %1021, %v1039_v46  }
  0x9b   : > { %422 = vperm.xlu1 %1033, %v348_v45  }
  0xa2   : > { %392 = vperm.xlu0 %1027, %v342_v47   ;;  %427 = vperm.xlu2 %1021, %v349_v49  }
  0xa3   : > { %412 = vperm.xlu1 %1033, %v346_v48  }
  0xaa   : > { %377 = vperm.xlu0 %1027, %v339_v50   ;;  %417 = vperm.xlu2 %1021, %v347_v52  }
  0xab   : > { %397 = vperm.xlu1 %1033, %v343_v51  }
  0xb2   : > { %362 = vperm.xlu0 %1027, %v336_v53   ;;  %402 = vperm.xlu2 %1021, %v344_v55  }
  0xb3   : > { %382 = vperm.xlu1 %1033, %v340_v54  }
  0xba   : > { %545 = vperm.xlu0 %1027, %v527_v56   ;;  %387 = vperm.xlu2 %1021, %v341_v58  }
  0xbb   : > { %367 = vperm.xlu1 %1033, %v337_v57  }
  0xc2   : > { %560 = vperm.xlu0 %1027, %v530_v59   ;;  %372 = vperm.xlu2 %1021, %v338_v61  }
  0xc3   : > { %352 = vperm.xlu1 %1033, %v334_v60  }
  0xca   : > { %575 = vperm.xlu0 %1027, %v533_v62   ;;  %357 = vperm.xlu2 %1021, %v335_v0  }
  0xcb   : > { %555 = vperm.xlu1 %1033, %v529_v63  }
  0xd2   : > { %550 = vperm.xlu2 %1021, %v528_v2  }
  0xd3   : > { %570 = vperm.xlu1 %1033, %v532_v1  }
  0xda   : > { %565 = vperm.xlu2 %1021, %v531_v3  }
  0xe2   : > { %580 = vperm.xlu2 %1021, %v534_v4  }
  0xeb   : > { %v1024_v5 = vpop.permute.xlu2 %1023 }
  0xec   : > { %v1025_v6 = vunpack.i.l.bf16 %v1024_v5  ;;  %v1026_v7 = vunpack.i.h.bf16 %v1024_v5 }
  0xee   : > { %438 = vmatpush.msra.mxu0 %v1025_v6  ;;  %972 = vmatpush.msra.mxu3 %v1025_v6 }
  0xf0   : > { %439 = vmatpush.msra.mxu0 %v1026_v7  ;;  %973 = vmatpush.msra.mxu3 %v1026_v7 }
  0xf4   : > { %v1041_v16 = vpop.permute.xlu2 %1040 }
  0xf5   : > { %v1042_v17 = vunpack.i.l.bf16 %v1041_v16  ;;  %v1043_v22 = vunpack.i.h.bf16 %v1041_v16 }
  0xfc   : > { %v428_v46 = vpop.permute.xlu2 %427 }
 0x104   : > { %v1030_v8 = vpop.permute.xlu0 %1029  ;;  %v418_v51 = vpop.permute.xlu2 %417 }
 0x105   : > { %v1031_v9 = vunpack.i.l.bf16 %v1030_v8  ;;  %v1036_v10 = vpop.permute.xlu1 %1035  ;;  %v1032_v11 = vunpack.i.h.bf16 %v1030_v8 }
 0x106   : > { %v1037_v12 = vunpack.i.l.bf16 %v1036_v10  ;;  %v1038_v15 = vunpack.i.h.bf16 %v1036_v10 }
 0x107   : > { %440 = vmatpush.msra.mxu0 %v1031_v9  ;;  %974 = vmatpush.msra.mxu3 %v1031_v9 }
 0x109   : > { %441 = vmatpush.msra.mxu0 %v1032_v11  ;;  %975 = vmatpush.msra.mxu3 %v1032_v11 }
 0x10b   : > { %442 = vmatpush.msra.mxu0 %v1037_v12  ;;  %976 = vmatpush.msra.mxu3 %v1037_v12 }
 0x10c   : > { %v408_v55 = vpop.permute.xlu0 %407  ;;  %v403_v57 = vpop.permute.xlu2 %402 }
 0x10d   : > { %443 = vmatpush.msra.mxu0 %v1038_v15  ;;  %977 = vmatpush.msra.mxu3 %v1038_v15  ;;  %v423_v48 = vpop.permute.xlu1 %422 }
 0x10f   : > { %444 = vmatpush.msra.mxu0 %v1042_v17  ;;  %978 = vmatpush.msra.mxu3 %v1042_v17 }
 0x111   : > { %445 = vmatpush.msra.mxu0 %v1043_v22  ;;  %979 = vmatpush.msra.mxu3 %v1043_v22 }
 0x112   : > { %446 = vmatmul.f32.vlgmr.msra.gmra.mxu0 %v318_v23  ;;  %473 = vmatmul.f32.vlgmr.msra.gmra.mxu3 %v327_v24 }
 0x114   : > { %v393_v1 = vpop.permute.xlu0 %392  ;;  %v388_v4 = vpop.permute.xlu2 %387 }
 0x115   : > { %v413_v53 = vpop.permute.xlu1 %412 }
 0x11a   : > { %449 = vmatmul.f32.gmra.mxu0 %v319_v25  ;;  %476 = vmatmul.f32.gmra.mxu3 %v328_v26 }
 0x11c   : > { %v378_v17 = vpop.permute.xlu0 %377  ;;  %v373_v24 = vpop.permute.xlu2 %372 }
 0x11d   : > { %v398_v58 = vpop.permute.xlu1 %397 }
 0x122   : > { %452 = vmatmul.f32.gmra.mxu0 %v320_v27  ;;  %479 = vmatmul.f32.gmra.mxu3 %v329_v28 }
 0x125   : > { %v383_v7 = vpop.permute.xlu1 %382 }
 0x12a   : > { %455 = vmatmul.f32.gmra.mxu0 %v321_v29  ;;  %482 = vmatmul.f32.gmra.mxu3 %v330_v30 }
 0x12d   : > { %v368_v27 = vpop.permute.xlu1 %367 }
 0x132   : > { %458 = vmatmul.f32.gmra.mxu0 %v322_v31  ;;  %485 = vmatmul.f32.gmra.mxu3 %v331_v32 }
 0x13a   : > { %461 = vmatmul.f32.gmra.mxu0 %v323_v33  ;;  %488 = vmatmul.f32.gmra.mxu3 %v332_v34  ;;  %v363_v34 = vpop.permute.xlu0 %362 }
 0x142   : > { %464 = vmatmul.f32.gmra.mxu0 %v324_v35  ;;  %491 = vmatmul.f32.gmra.mxu3 %v333_v36 }
 0x14a   : > { %467 = vmatmul.f32.gmra.mxu0 %v325_v37  ;;  %v358_v37 = vpop.permute.xlu2 %357 }
 0x152   : > { %470 = vmatmul.f32.gmra.mxu0 %v326_v38 }
 0x18f   : > { %v1297_v39 = vpop.f32.mrf.mxu0 }
 0x195   : > { %v474_v40 = vpop.f32.mrf.mxu3 }
 0x196   : > { %v475_v11 = vadd.f32 %v474_v40, %v398_v58  ;;  %v520_v58 = vld [vmem:[%s1419_s3 + $0x48] sm:$0xff] }
 0x197   : > { %v1299_v41 = vpop.f32.mrf.mxu0 }
 0x198   : > { %v504_v22 = vmax.f32 %v475_v11, 0.0  ;;  %v451_v38 = vadd.f32 %v1299_v41, %v358_v37  ;;  %v511_v41 = vld [vmem:[%s1419_s3] sm:$0xff] }
 0x19d   : > { %v477_v42 = vpop.f32.mrf.mxu3 }
 0x19e   : > { %v478_v8 = vadd.f32 %v477_v42, %v403_v57  ;;  %v353_v42 = vpop.permute.xlu1 %352 }
 0x19f   : > { %v1301_v43 = vpop.f32.mrf.mxu0 }
 0x1a0   : > { %v505_v15 = vmax.f32 %v478_v8, 0.0  ;;  %v454_v35 = vadd.f32 %v1301_v43, %v363_v34 }
 0x1a5   : > { %v480_v44 = vpop.f32.mrf.mxu3 }
 0x1a6   : > { %v481_v5 = vadd.f32 %v480_v44, %v408_v55  ;;  %v448_v44 = vadd.f32 %v1297_v39, %v353_v42  ;;  %v518_v39 = vld [vmem:[%s1419_s3 + $0x38] sm:$0xff]  ;;  %v546_v55 = vpop.permute.xlu0 %545 }
 0x1a7   : > { %v1303_v45 = vpop.f32.mrf.mxu0 }
 0x1a8   : > { %v506_v12 = vmax.f32 %v481_v5, 0.0  ;;  %v457_v32 = vadd.f32 %v1303_v45, %v368_v27  ;;  %v497_v45 = vmax.f32 %v454_v35, 0.0  ;;  %v495_v43 = vmax.f32 %v448_v44, 0.0 }
 0x1aa   : > { %v498_v40 = vmax.f32 %v457_v32, 0.0 }
 0x1ad   : > { %v483_v47 = vpop.f32.mrf.mxu3 }
 0x1ae   : > { %v484_v2 = vadd.f32 %v483_v47, %v413_v53  ;;  %v512_v47 = vld [vmem:[%s1419_s3 + $0x8] sm:$0xff]  ;;  %v519_v53 = vld [vmem:[%s1419_s3 + $0x40] sm:$0xff] }
 0x1af   : > { %v1305_v49 = vpop.f32.mrf.mxu0 }
 0x1b0   : > { %v507_v9 = vmax.f32 %v484_v2, 0.0  ;;  %v460_v30 = vadd.f32 %v1305_v49, %v373_v24  ;;  %v514_v49 = vld [vmem:[%s1419_s3 + $0x18] sm:$0xff] }
 0x1b2   : > { %v499_v36 = vmax.f32 %v460_v30, 0.0  ;;  %v525_v30 = vld [vmem:[%s1419_s3 + $0x70] sm:$0xff] }
 0x1b5   : > { %v486_v50 = vpop.f32.mrf.mxu3 }
 0x1b6   : > { %v487_v63 = vadd.f32 %v486_v50, %v418_v51  ;;  %v515_v50 = vld [vmem:[%s1419_s3 + $0x20] sm:$0xff]  ;;  %v516_v51 = vld [vmem:[%s1419_s3 + $0x28] sm:$0xff] }
 0x1b7   : > { %v462_v52 = vpop.f32.mrf.mxu0 }
 0x1b8   : > { %v508_v6 = vmax.f32 %v487_v63, 0.0  ;;  %v463_v28 = vadd.f32 %v462_v52, %v378_v17  ;;  %v517_v52 = vld [vmem:[%s1419_s3 + $0x30] sm:$0xff] }
 0x1b9   : > { %v521_v63 = vld [vmem:[%s1419_s3 + $0x50] sm:$0xff] }
 0x1ba   : > { %v500_v33 = vmax.f32 %v463_v28, 0.0 }
 0x1bd   : > { %v489_v54 = vpop.f32.mrf.mxu3 }
 0x1be   : > { %v490_v60 = vadd.f32 %v489_v54, %v423_v48  ;;  %v513_v48 = vld [vmem:[%s1419_s3 + $0x10] sm:$0xff]  ;;  %v551_v54 = vpop.permute.xlu2 %550 }
 0x1bf   : > { %v465_v56 = vpop.f32.mrf.mxu0 }
 0x1c0   : > { %v509_v3 = vmax.f32 %v490_v60, 0.0  ;;  %v466_v25 = vadd.f32 %v465_v56, %v383_v7  ;;  %v522_v7 = vld [vmem:[%s1419_s3 + $0x58] sm:$0xff] }
 0x1c2   : > { %v501_v31 = vmax.f32 %v466_v25, 0.0 }
 0x1c5   : > { %v492_v59 = vpop.f32.mrf.mxu3 }
 0x1c6   : > { %v493_v61 = vadd.f32 %v492_v59, %v428_v46  ;;  %v496_v46 = vmax.f32 %v451_v38, 0.0 }
 0x1c7   : > { %v468_v62 = vpop.f32.mrf.mxu0 }
 0x1c8   : > { %v510_v0 = vmax.f32 %v493_v61, 0.0  ;;  %v469_v23 = vadd.f32 %v468_v62, %v388_v4  ;;  %v566_v61 = vpop.permute.xlu2 %565 }
 0x1ca   : > { %615 = vmatpush.msra.mxu1 %v510_v0  ;;  %980 = vmatpush.msra.mxu2 %v510_v0  ;;  %v502_v29 = vmax.f32 %v469_v23, 0.0 }
 0x1cb   : > { %981 = vmatpush.msrb.mxu3 %v510_v0 }
 0x1cc   : > { %616 = vmatpush.msra.mxu1 %v509_v3  ;;  %982 = vmatpush.msra.mxu2 %v509_v3 }
 0x1cd   : > { %983 = vmatpush.msrb.mxu3 %v509_v3  ;;  %v556_v3 = vpop.permute.xlu1 %555 }
 0x1ce   : > { %617 = vmatpush.msra.mxu1 %v508_v6  ;;  %984 = vmatpush.msra.mxu2 %v508_v6 }
 0x1cf   : > { %985 = vmatpush.msrb.mxu3 %v508_v6  ;;  %v471_v10 = vpop.f32.mrf.mxu0 }
 0x1d0   : > { %618 = vmatpush.msra.mxu1 %v507_v9  ;;  %986 = vmatpush.msra.mxu2 %v507_v9  ;;  %v472_v16 = vadd.f32 %v471_v10, %v393_v1 }
 0x1d1   : > { %987 = vmatpush.msrb.mxu3 %v507_v9  ;;  %v581_v9 = vpop.permute.xlu2 %580 }
 0x1d2   : > { %619 = vmatpush.msra.mxu1 %v506_v12  ;;  %988 = vmatpush.msra.mxu2 %v506_v12  ;;  %v503_v26 = vmax.f32 %v472_v16, 0.0 }
 0x1d3   : > { %989 = vmatpush.msrb.mxu3 %v506_v12 }
 0x1d4   : > { %620 = vmatpush.msra.mxu1 %v505_v15  ;;  %990 = vmatpush.msra.mxu2 %v505_v15 }
 0x1d5   : > { %991 = vmatpush.msrb.mxu3 %v505_v15 }
 0x1d6   : > { %621 = vmatpush.msra.mxu1 %v504_v22  ;;  %992 = vmatpush.msra.mxu2 %v504_v22 }
 0x1d7   : > { %993 = vmatpush.msrb.mxu3 %v504_v22  ;;  %v561_v22 = vpop.permute.xlu0 %560 }
 0x1d8   : > { %622 = vmatpush.msra.mxu1 %v503_v26  ;;  %994 = vmatpush.msra.mxu2 %v503_v26 }
 0x1d9   : > { %995 = vmatpush.msrb.mxu3 %v503_v26 }
 0x1da   : > { %623 = vmatpush.msra.mxu1 %v502_v29  ;;  %996 = vmatpush.msra.mxu2 %v502_v29 }
 0x1db   : > { %997 = vmatpush.msrb.mxu3 %v502_v29  ;;  %v523_v29 = vld [vmem:[%s1419_s3 + $0x60] sm:$0xff] }
 0x1dc   : > { %624 = vmatpush.msra.mxu1 %v501_v31  ;;  %998 = vmatpush.msra.mxu2 %v501_v31 }
 0x1dd   : > { %999 = vmatpush.msrb.mxu3 %v501_v31 }
 0x1de   : > { %625 = vmatpush.msra.mxu1 %v500_v33  ;;  %1000 = vmatpush.msra.mxu2 %v500_v33 }
 0x1df   : > { %1001 = vmatpush.msrb.mxu3 %v500_v33 }
 0x1e0   : > { %626 = vmatpush.msra.mxu1 %v499_v36  ;;  %1002 = vmatpush.msra.mxu2 %v499_v36 }
 0x1e1   : > { %1003 = vmatpush.msrb.mxu3 %v499_v36 }
 0x1e2   : > { %627 = vmatpush.msra.mxu1 %v498_v40  ;;  %1004 = vmatpush.msra.mxu2 %v498_v40 }
 0x1e3   : > { %1005 = vmatpush.msrb.mxu3 %v498_v40 }
 0x1e4   : > { %628 = vmatpush.msra.mxu1 %v497_v45  ;;  %1006 = vmatpush.msra.mxu2 %v497_v45 }
 0x1e5   : > { %1007 = vmatpush.msrb.mxu3 %v497_v45 }
 0x1e6   : > { %629 = vmatpush.msra.mxu1 %v496_v46  ;;  %1008 = vmatpush.msra.mxu2 %v496_v46 }
 0x1e7   : > { %1009 = vmatpush.msrb.mxu3 %v496_v46  ;;  %v524_v46 = vld [vmem:[%s1419_s3 + $0x68] sm:$0xff] }
 0x1e8   : > { %630 = vmatpush.msra.mxu1 %v495_v43  ;;  %1010 = vmatpush.msra.mxu2 %v495_v43 }
 0x1e9   : > { %1011 = vmatpush.msrb.mxu3 %v495_v43  ;;  %631 = vmatmul.f32.vlgmr.msra.gmra.mxu1 %v511_v41  ;;  %v526_v43 = vld [vmem:[%s1419_s3 + $0x78] sm:$0xff] }
 0x1ea   : > { %652 = vmatmul.f32.vlgmr.msra.gmra.mxu2 %v518_v39  ;;  %667 = vmatmul.f32.vlgmr.msrb.gmra.mxu3 %v525_v30 }
 0x1f1   : > { %634 = vmatmul.f32.gmra.mxu1 %v512_v47 }
 0x1f2   : > { %655 = vmatmul.f32.gmra.mxu2 %v519_v53  ;;  %669 = vmatmul.f32.gmra.mxu3 %v526_v43 }
 0x1f9   : > { %637 = vmatmul.f32.gmra.mxu1 %v513_v48 }
 0x1fa   : > { %657 = vmatmul.f32.gmra.mxu2 %v520_v58 }
 0x201   : > { %640 = vmatmul.f32.gmra.mxu1 %v514_v49 }
 0x202   : > { %659 = vmatmul.f32.gmra.mxu2 %v521_v63 }
 0x209   : > { %643 = vmatmul.f32.gmra.mxu1 %v515_v50 }
 0x20a   : > { %661 = vmatmul.f32.gmra.mxu2 %v522_v7 }
 0x211   : > { %646 = vmatmul.f32.gmra.mxu1 %v516_v51 }
 0x212   : > { %663 = vmatmul.f32.gmra.mxu2 %v523_v29 }
 0x219   : > { %649 = vmatmul.f32.gmra.mxu1 %v517_v52 }
 0x21a   : > { %665 = vmatmul.f32.gmra.mxu2 %v524_v46 }
 0x266   : > { %v632_v56 = vpop.f32.mrf.mxu1 }
 0x267   : > { %v633_v57 = vadd.f32 %v632_v56, %v546_v55 }
 0x269   : > { %v960_v59 = vmul.f32 -1.442695, %v633_v57 }
 0x26b   : > { %1044 = vpow2.f32 %v960_v59  ;;  %v571_v59 = vpop.permute.xlu1 %570 }
 0x26d   : > { %v653_v5 = vpop.f32.mrf.mxu2 }
 0x26e   : > { %v635_v60 = vpop.f32.mrf.mxu1  ;;  %v654_v12 = vadd.f32 %v653_v5, %v581_v9 }
 0x26f   : > { %v636_v62 = vadd.f32 %v635_v60, %v551_v54 }
 0x270   : > { %v967_v23 = vmul.f32 -1.442695, %v654_v12  ;;  %v576_v12 = vpop.permute.xlu0 %575 }
 0x271   : > { %v1045_v0 = vpop.eup %1044  ;;  %v961_v1 = vmul.f32 -1.442695, %v636_v62 }
 0x272   : > { %v696_v2 = vadd.f32 1.0, %v1045_v0 }
 0x273   : > { %1046 = vpow2.f32 %v961_v1 }
 0x274   : > { %1048 = vrcp.f32 %v696_v2  ;;  %v715_v25 = vand.u32 2147483648, %v696_v2  ;;  %v713_v28 = vand.u32 2147483647, %v696_v2  ;;  %vm709_vm1 = vweird.f32 %v696_v2 }
 0x276   : > { %v638_v4 = vpop.f32.mrf.mxu1  ;;  %v716_v34 = vor.u32 1.1754944e-38, %v715_v25  ;;  %vm714_vm3 = vcmp.eq.f32.partialorder %v713_v28, 8.507059e+37 }
 0x277   : > { %v639_v6 = vadd.f32 %v638_v4, %v556_v3 }
 0x279   : > { %v1047_v8 = vpop.eup %1046  ;;  %v962_v10 = vmul.f32 -1.442695, %v639_v6 }
 0x27a   : > { %v1049_v11 = vpop.eup %1048  ;;  %v697_v15 = vadd.f32 1.0, %v1047_v8 }
 0x27b   : > { %v705_v16 = vmul.f32 %v1049_v11, %v696_v2  ;;  %vm710_vm0 = vweird.f32 %v1049_v11 }
 0x27c   : > { %1050 = vrcp.f32 %v697_v15  ;;  %vm711_vm2 = vmor %vm709_vm1, %vm710_vm0  ;;  %v730_v45 = vand.u32 2147483648, %v697_v15  ;;  %v728_v47 = vand.u32 2147483647, %v697_v15  ;;  %vm724_vm5 = vweird.f32 %v697_v15 }
 0x27d   : > { %1052 = vpow2.f32 %v962_v10  ;;  %v706_v17 = vsub.f32 1.0, %v705_v16 }
 0x27e   : > { %v641_v24 = vpop.f32.mrf.mxu1  ;;  %1054 = vpow2.f32 %v967_v23  ;;  %v731_v53 = vor.u32 1.1754944e-38, %v730_v45  ;;  %vm729_vm7 = vcmp.eq.f32.partialorder %v728_v47, 8.507059e+37 }
 0x27f   : > { %v642_v26 = vadd.f32 %v641_v24, %v561_v22  ;;  %v707_v27 = vmul.f32 %v1049_v11, %v706_v17 }
 0x281   : > { %v963_v31 = vmul.f32 -1.442695, %v642_v26  ;;  %v708_v32 = vadd.f32 %v1049_v11, %v707_v27 }
 0x282   : > { %v1051_v33 = vpop.eup %1050 }
 0x283   : > { %v1053_v35 = vpop.eup %1052  ;;  %1056 = vpow2.f32 %v963_v31  ;;  %v712_v36 = vsel %vm711_vm2, %v1049_v11, %v708_v32  ;;  %v720_v37 = vmul.f32 %v1051_v33, %v697_v15  ;;  %vm725_vm4 = vweird.f32 %v1051_v33 }
 0x284   : > { %v698_v38 = vadd.f32 1.0, %v1053_v35  ;;  %v717_v40 = vsel %vm714_vm3, %v716_v34, %v712_v36  ;;  %v1055_v48 = vpop.eup %1054  ;;  %vm726_vm6 = vmor %vm724_vm5, %vm725_vm4 }
 0x285   : > { %826 = vperm.xlu1 %1033, %v717_v40   ;;  %v721_v42 = vsub.f32 1.0, %v720_v37  ;;  %v1360_v56 = vadd.f32 1.0, %v1055_v48 }
 0x286   : > { %1058 = vrcp.f32 %v698_v38  ;;  %v644_v44 = vpop.f32.mrf.mxu1  ;;  %v745_v63 = vand.u32 2147483648, %v698_v38  ;;  %v743_v3 = vand.u32 2147483647, %v698_v38  ;;  %vm739_vm9 = vweird.f32 %v698_v38 }
 0x287   : > { %v645_v41 = vadd.f32 %v644_v44, %v566_v61  ;;  %v722_v39 = vmul.f32 %v1051_v33, %v721_v42  ;;  %vm814_vm5 = vweird.f32 %v1360_v56 }
 0x288   : > { %v746_v8 = vor.u32 1.1754944e-38, %v745_v63  ;;  %vm744_vm11 = vcmp.eq.f32.partialorder %v743_v3, 8.507059e+37 }
 0x289   : > { %v1057_v49 = vpop.eup %1056  ;;  %v964_v50 = vmul.f32 -1.442695, %v645_v41  ;;  %v723_v51 = vadd.f32 %v1051_v33, %v722_v39 }
 0x28a   : > { %v699_v52 = vadd.f32 1.0, %v1057_v49 }
 0x28b   : > { %1060 = vpow2.f32 %v964_v50  ;;  %v727_v54 = vsel %vm726_vm6, %v1051_v33, %v723_v51 }
 0x28c   : > { %v1059_v55 = vpop.eup %1058  ;;  %1062 = vrcp.f32 %v699_v52  ;;  %v732_v57 = vsel %vm729_vm7, %v731_v53, %v727_v54  ;;  %v760_v17 = vand.u32 2147483648, %v699_v52  ;;  %v758_v24 = vand.u32 2147483647, %v699_v52 }
 0x28d   : > { %831 = vperm.xlu0 %1027, %v732_v57   ;;  %v735_v58 = vmul.f32 %v1059_v55, %v698_v38  ;;  %1064 = vrcp.f32 %v1360_v56  ;;  %vm740_vm8 = vweird.f32 %v1059_v55  ;;  %vm754_vm13 = vweird.f32 %v699_v52 }
 0x28e   : > { %v647_v60 = vpop.f32.mrf.mxu1  ;;  %vm741_vm10 = vmor %vm739_vm9, %vm740_vm8  ;;  %v761_v31 = vor.u32 1.1754944e-38, %v760_v17  ;;  %vm759_vm15 = vcmp.eq.f32.partialorder %v758_v24, 8.507059e+37 }
 0x28f   : > { %v648_v61 = vadd.f32 %v647_v60, %v571_v59  ;;  %v736_v62 = vsub.f32 1.0, %v735_v58 }
 0x291   : > { %v1061_v0 = vpop.eup %1060  ;;  %v965_v1 = vmul.f32 -1.442695, %v648_v61  ;;  %v737_v2 = vmul.f32 %v1059_v55, %v736_v62 }
 0x292   : > { %v1063_v4 = vpop.eup %1062  ;;  %v700_v5 = vadd.f32 1.0, %v1061_v0 }
 0x293   : > { %1066 = vpow2.f32 %v965_v1  ;;  %v738_v6 = vadd.f32 %v1059_v55, %v737_v2  ;;  %v750_v7 = vmul.f32 %v1063_v4, %v699_v52  ;;  %v1363_v11 = vpop.eup %1064  ;;  %vm755_vm12 = vweird.f32 %v1063_v4 }
 0x294   : > { %1068 = vrcp.f32 %v700_v5  ;;  %v810_v28 = vmul.f32 %v1363_v11, %v1360_v56  ;;  %vm756_vm14 = vmor %vm754_vm13, %vm755_vm12  ;;  %v775_v37 = vand.u32 2147483648, %v700_v5  ;;  %v773_v40 = vand.u32 2147483647, %v700_v5 }
 0x295   : > { %v742_v9 = vsel %vm741_vm10, %v1059_v55, %v738_v6  ;;  %v751_v10 = vsub.f32 1.0, %v750_v7  ;;  %vm769_vm1 = vweird.f32 %v700_v5  ;;  %vm815_vm4 = vweird.f32 %v1363_v11 }
 0x296   : > { %v747_v15 = vsel %vm744_vm11, %v746_v8, %v742_v9  ;;  %v650_v16 = vpop.f32.mrf.mxu1  ;;  %v811_v36 = vsub.f32 1.0, %v810_v28  ;;  %v776_v41 = vor.u32 1.1754944e-38, %v775_v37  ;;  %vm774_vm3 = vcmp.eq.f32.partialorder %v773_v40, 8.507059e+37  ;;  %vm816_vm7 = vmor %vm814_vm5, %vm815_vm4  ;;  %v656_v9 = vpop.f32.mrf.mxu2  ;;  %v1080_v37 = vld [vmem:[%s1141_s23 + $0x40] sm:$0xff]  ;;  %v1081_v40 = vld [vmem:[%s1141_s23 + $0x48] sm:$0xff] }
 0x297   : > { %836 = vperm.xlu2 %1021, %v747_v15   ;;  %v651_v22 = vadd.f32 %v650_v16, %v576_v12  ;;  %v752_v23 = vmul.f32 %v1063_v4, %v751_v10  ;;  %v820_v52 = vand.u32 2147483648, %v1360_v56  ;;  %v818_v55 = vand.u32 2147483647, %v1360_v56 }
 0x298   : > { %v812_v45 = vmul.f32 %v1363_v11, %v811_v36 }
 0x299   : > { %v1067_v25 = vpop.eup %1066  ;;  %v966_v26 = vmul.f32 -1.442695, %v651_v22  ;;  %v753_v27 = vadd.f32 %v1063_v4, %v752_v23  ;;  %v821_v61 = vor.u32 1.1754944e-38, %v820_v52  ;;  %vm819_vm11 = vcmp.eq.f32.partialorder %v818_v55, 8.507059e+37 }
 0x29a   : > { %v1069_v29 = vpop.eup %1068  ;;  %v701_v30 = vadd.f32 1.0, %v1067_v25  ;;  %v813_v50 = vadd.f32 %v1363_v11, %v812_v45  ;;  %v1082_v45 = vld [vmem:[%s1141_s23 + $0x70] sm:$0xff] }
 0x29b   : > { %1070 = vpow2.f32 %v966_v26  ;;  %v757_v32 = vsel %vm756_vm14, %v1063_v4, %v753_v27  ;;  %v765_v33 = vmul.f32 %v1069_v29, %v700_v5  ;;  %vm770_vm0 = vweird.f32 %v1069_v29  ;;  %v668_v27 = vpop.f32.mrf.mxu3 }
 0x29c   : > { %1072 = vrcp.f32 %v701_v30  ;;  %v762_v34 = vsel %vm759_vm15, %v761_v31, %v757_v32  ;;  %vm771_vm2 = vmor %vm769_vm1, %vm770_vm0  ;;  %v790_v51 = vand.u32 2147483648, %v701_v30  ;;  %v788_v54 = vand.u32 2147483647, %v701_v30  ;;  %v1078_v32 = vld [vmem:[%s1141_s23 + $0x30] sm:$0xff] }
 0x29d   : > { %841 = vperm.xlu1 %1033, %v762_v34   ;;  %v766_v35 = vsub.f32 1.0, %v765_v33  ;;  %vm784_vm8 = vweird.f32 %v701_v30  ;;  %v817_v58 = vsel %vm816_vm7, %v1363_v11, %v813_v50  ;;  %v1079_v34 = vld [vmem:[%s1141_s23 + $0x38] sm:$0xff] }
 0x29e   : > { %v791_v60 = vor.u32 1.1754944e-38, %v790_v51  ;;  %vm789_vm10 = vcmp.eq.f32.partialorder %v788_v54, 8.507059e+37  ;;  %v822_v1 = vsel %vm819_vm11, %v821_v61, %v817_v58  ;;  %v658_v10 = vpop.f32.mrf.mxu2 }
 0x29f   : > { %v767_v38 = vmul.f32 %v1069_v29, %v766_v35 }
 0x2a1   : > { %v1071_v42 = vpop.eup %1070  ;;  %v768_v44 = vadd.f32 %v1069_v29, %v767_v38 }
 0x2a2   : > { %v1073_v46 = vpop.eup %1072  ;;  %v702_v43 = vadd.f32 1.0, %v1071_v42 }
 0x2a3   : > { %v772_v39 = vsel %vm771_vm2, %v1069_v29, %v768_v44  ;;  %v780_v47 = vmul.f32 %v1073_v46, %v701_v30  ;;  %vm785_vm6 = vweird.f32 %v1073_v46  ;;  %v1077_v29 = vld [vmem:[%s1141_s23 + $0x58] sm:$0xff] }
 0x2a4   : > { %1074 = vrcp.f32 %v702_v43  ;;  %v777_v48 = vsel %vm774_vm3, %v776_v41, %v772_v39  ;;  %vm786_vm9 = vmor %vm784_vm8, %vm785_vm6  ;;  %v805_v56 = vand.u32 2147483648, %v702_v43  ;;  %v803_v4 = vand.u32 2147483647, %v702_v43 }
 0x2a5   : > { %846 = vperm.xlu0 %1027, %v777_v48   ;;  %v781_v49 = vsub.f32 1.0, %v780_v47  ;;  %vm799_vm13 = vweird.f32 %v702_v43  ;;  %v1084_v47 = vld [vmem:[%s1141_s23 + $0x60] sm:$0xff] }
 0x2a6   : > { %v806_v6 = vor.u32 1.1754944e-38, %v805_v56  ;;  %vm804_vm15 = vcmp.eq.f32.partialorder %v803_v4, 8.507059e+37  ;;  %v660_v16 = vpop.f32.mrf.mxu2 }
 0x2a7   : > { %v782_v53 = vmul.f32 %v1073_v46, %v781_v49  ;;  %v1085_v49 = vld [vmem:[%s1141_s23 + $0x68] sm:$0xff] }
 0x2a9   : > { %v783_v57 = vadd.f32 %v1073_v46, %v782_v53 }
 0x2aa   : > { %v1075_v59 = vpop.eup %1074 }
 0x2ab   : > { %v787_v62 = vsel %vm786_vm9, %v1073_v46, %v783_v57  ;;  %v795_v63 = vmul.f32 %v1075_v59, %v702_v43  ;;  %vm800_vm12 = vweird.f32 %v1075_v59  ;;  %v1083_v43 = vld [vmem:[%s1141_s23 + $0x78] sm:$0xff] }
 0x2ac   : > { %v792_v0 = vsel %vm789_vm10, %v791_v60, %v787_v62  ;;  %vm801_vm14 = vmor %vm799_vm13, %vm800_vm12 }
 0x2ad   : > { %851 = vperm.xlu2 %1021, %v792_v0   ;;  %861 = vperm.xlu0 %1027, %v822_v1   ;;  %v796_v2 = vsub.f32 1.0, %v795_v63 }
 0x2ae   : > { %v662_v24 = vpop.f32.mrf.mxu2 }
 0x2af   : > { %v797_v3 = vmul.f32 %v1075_v59, %v796_v2 }
 0x2b1   : > { %v798_v5 = vadd.f32 %v1075_v59, %v797_v3 }
 0x2b3   : > { %v802_v7 = vsel %vm801_vm14, %v1075_v59, %v798_v5 }
 0x2b4   : > { %v807_v8 = vsel %vm804_vm15, %v806_v6, %v802_v7 }
 0x2b5   : > { %856 = vperm.xlu1 %1033, %v807_v8  }
 0x2b6   : > { %v664_v26 = vpop.f32.mrf.mxu2 }
 0x2f1   : > { %v837_v11 = vpop.permute.xlu2 %836 }
 0x2f2   : > { %v868_v12 = vmul.f32 %v837_v11, %v1154_v13  ;;  %v869_v15 = vmul.f32 %v837_v11, %v1157_v14 }
 0x2f4   : > { %884 = vst [vmem:[%s1379_s8 + $0x20] sm:$0xff] %v868_v12 }
 0x2f5   : > { %885 = vst [vmem:[%s1379_s8 + $0x28] sm:$0xff] %v869_v15 }
 0x2f7   : > { %v827_v17 = vpop.permute.xlu1 %826 }
 0x2f8   : > { %v864_v22 = vmul.f32 %v827_v17, %v1168_v20  ;;  %v865_v23 = vmul.f32 %v827_v17, %v1171_v21  ;;  %v1076_v21 = vld [vmem:[%s1141_s23 + $0x50] sm:$0xff] }
 0x2fa   : > { %880 = vst [vmem:[%s1379_s8] sm:$0xff] %v864_v22 }
 0x2fb   : > { %881 = vst [vmem:[%s1379_s8 + $0x8] sm:$0xff] %v865_v23 }
 0x2ff   : > { %v832_v25 = vpop.permute.xlu0 %831 }
 0x300   : > { %v866_v13 = vmul.f32 %v832_v25, %v1162_v18  ;;  %v867_v14 = vmul.f32 %v832_v25, %v1165_v19  ;;  %v666_v18 = vpop.f32.mrf.mxu2  ;;  %v670_v19 = vpop.f32.mrf.mxu3 }
 0x302   : > { %882 = vst [vmem:[%s1379_s8 + $0x10] sm:$0xff] %v866_v13 }
 0x303   : > { %883 = vst [vmem:[%s1379_s8 + $0x18] sm:$0xff] %v867_v14 }
 0x307   : > { %v852_v20 = vpop.permute.xlu2 %851 }
 0x308   : > { %v874_v28 = vmul.f32 %v1076_v21, %v852_v20  ;;  %v875_v30 = vmul.f32 %v1077_v29, %v852_v20 }
 0x30a   : > { %890 = vst [vmem:[%s1379_s8 + $0x50] sm:$0xff] %v874_v28 }
 0x30b   : > { %891 = vst [vmem:[%s1379_s8 + $0x58] sm:$0xff] %v875_v30 }
 0x30f   : > { %v842_v31 = vpop.permute.xlu1 %841 }
 0x310   : > { %v870_v33 = vmul.f32 %v1078_v32, %v842_v31  ;;  %v871_v35 = vmul.f32 %v1079_v34, %v842_v31 }
 0x312   : > { %886 = vst [vmem:[%s1379_s8 + $0x30] sm:$0xff] %v870_v33 }
 0x313   : > { %887 = vst [vmem:[%s1379_s8 + $0x38] sm:$0xff] %v871_v35 }
 0x317   : > { %v847_v36 = vpop.permute.xlu0 %846 }
 0x318   : > { %v872_v38 = vmul.f32 %v1080_v37, %v847_v36  ;;  %v873_v42 = vmul.f32 %v1081_v40, %v847_v36 }
 0x31a   : > { %888 = vst [vmem:[%s1379_s8 + $0x40] sm:$0xff] %v872_v38 }
 0x31b   : > { %889 = vst [vmem:[%s1379_s8 + $0x48] sm:$0xff] %v873_v42 }
 0x31f   : > { %v862_v44 = vpop.permute.xlu0 %861 }
 0x320   : > { %v878_v46 = vmul.f32 %v1082_v45, %v862_v44  ;;  %v879_v41 = vmul.f32 %v1083_v43, %v862_v44 }
 0x322   : > { %894 = vst [vmem:[%s1379_s8 + $0x70] sm:$0xff] %v878_v46 }
 0x323   : > { %895 = vst [vmem:[%s1379_s8 + $0x78] sm:$0xff] %v879_v41 }
 0x327   : > { %v857_v39 = vpop.permute.xlu1 %856 }
 0x328   : > { %v876_v48 = vmul.f32 %v1084_v47, %v857_v39  ;;  %v877_v50 = vmul.f32 %v1085_v49, %v857_v39 }
 0x32a   : > { %892 = vst [vmem:[%s1379_s8 + $0x60] sm:$0xff] %v876_v48 }
 0x32b   : > { %893 = vst [vmem:[%s1379_s8 + $0x68] sm:$0xff] %v877_v50 }
 0x32c PF: > { %s15_s18 = sadd.s32 1, %s1092_s18  }
 0x32d   : > { %p12_p4 = scmp.ge.s32.totalorder %s15_s18, 4  }
 0x32f   :  { %14 = sbr.rel (!%p12_p4) target bundleno = 1 (0x1), region = 70 }

</bundles_post_ra>
